<compile_context>
chip_gen: v5e
topology: v5e:2x2
jax: 0.10.0
libtpu: 0.0.40
codegen_flags: <defaults>
</compile_context>

<pallas_src>
import functools
import math

import jax
import jax.numpy as jnp
from jax.experimental import pallas as pl
from jax.experimental.pallas import tpu as pltpu


def _att_tsa_kernel(sent2_ref, w_ref, v_ref, scores_ref, xg_ref, *, B, L, H):
    f32 = jnp.float32
    bf16 = jnp.bfloat16
    Hd = H // 2
    G = 4 * H                      # fused gate width = 8 * Hd
    E2 = sent2_ref.shape[1]        # 2 * embed_dim
    LB = L * B
    Bp = scores_ref.shape[0]       # padded batch rows (multiple of 8)

    # ---- packed weight-slab views (static offsets, plain vector loads) ----
    wx = w_ref[0:E2, 0:G]                       # (2E, 8Hd) bf16  input  -> gates (both dirs)
    whh = w_ref[E2:E2 + H, 0:G]                 # (H,  8Hd) bf16  hidden -> gates (both dirs)
    wv = w_ref[E2 + H:E2 + 2 * H, 0:128]        # (H,  128) bf16  vec2label (lane padded)
    wh = w_ref[E2 + 2 * H:E2 + 3 * H, 0:H]      # (H,  H)   bf16  hidden2hidden
    bg = v_ref[0:1, 0:G]                        # (1,  8Hd) f32   fused LSTM bias
    bv = v_ref[1:2, 0:128]                      # (1,  128) f32   vec2label bias (-1e9 pad)
    bh = v_ref[2:3, 0:H]                        # (1,  H)   f32   hidden2hidden bias
    wc1 = v_ref[3:4, 0:H]                       # (1,  H)   f32   concatvec (context half)

    # ---- input projection for every timestep & both directions: ONE matmul ----
    xg_ref[...] = jnp.dot(sent2_ref[...], wx, preferred_element_type=f32) + bg   # (L*B, 8Hd)

    # ---- fused forward+backward recurrence, fully unrolled (L small & static) ----
    h = jnp.zeros((B, H), f32)     # combined state [h_fwd | h_bwd]
    c = jnp.zeros((B, H), f32)
    fwd = [None] * L
    bwd = [None] * L
    for s in range(L):
        gates = xg_ref[s * B:(s + 1) * B, :] + jnp.dot(
            h.astype(bf16), whh, preferred_element_type=f32)          # (B, 8Hd)
        # gate layout: [i_f i_b | f_f f_b | o_f o_b | g_f g_b]
        sig = jax.nn.sigmoid(gates[:, 0:3 * H])
        g = jnp.tanh(gates[:, 3 * H:4 * H])
        c = sig[:, H:2 * H] * c + sig[:, 0:H] * g
        h = sig[:, 2 * H:3 * H] * jnp.tanh(c)
        fwd[s] = h[:, 0:Hd]              # forward output for time s
        bwd[L - 1 - s] = h[:, Hd:H]      # backward output for time L-1-s

    # ---- register-resident BiLSTM context, flat row r = t*B + b ----
    ctx = jnp.concatenate(
        [jnp.concatenate(fwd, axis=0), jnp.concatenate(bwd, axis=0)], axis=1)   # (L*B, H) f32

    # ---- attention: one batched projection over all (t, b) rows ----
    cp = jnp.tanh(jnp.dot(ctx.astype(bf16), wh, preferred_element_type=f32) + bh)   # (L*B, H)
    # concatvec(tanh([ctx_proj | tgt_proj])) = wc1.tanh(ctx_proj) + const(sentence):
    # the target half and the scalar bias are constant over the time axis per sentence,
    # hence cancel exactly in the per-sentence time softmax -> dropped.
    e = jnp.sum(cp * wc1, axis=1, keepdims=True)                                     # (L*B, 1)

    # softmax over time within each sentence (flat row r belongs to sentence r % B);
    # one global max is an exact stabiliser (softmax is shift-invariant per sentence).
    p = jnp.exp(e - jnp.max(e, axis=0, keepdims=True))                               # (L*B, 1)

    # one-hot sentence-grouping matrix built in registers (no extra input DMA);
    # padded rows (r >= B) duplicate sentence r % B so the divide stays finite.
    rows = jax.lax.broadcasted_iota(jnp.int32, (Bp, LB), 0)
    cols = jax.lax.broadcasted_iota(jnp.int32, (Bp, LB), 1)
    if B & (B - 1) == 0:
        rb, cb = rows & (B - 1), cols & (B - 1)
    else:  # exact for small indices
        rf, cf = rows.astype(f32), cols.astype(f32)
        rb = rf - B * jnp.floor(rf * (1.0 / B))
        cb = cf - B * jnp.floor(cf * (1.0 / B))
    gat = jnp.where(rb == cb, 1.0, 0.0).astype(bf16)                                  # (Bp, L*B)

    # sents_vec[b] = (sum_t p[t,b] * ctx[t,b,:]) / (sum_t p[t,b])
    num = jnp.dot(gat, (p * ctx).astype(bf16), preferred_element_type=f32)            # (Bp, H)
    den = jnp.dot(gat, p.astype(bf16), preferred_element_type=f32)                    # (Bp, 1)
    sents_vec = num * pl.reciprocal(den, approx=True)

    # vec2label + log_softmax written as one lane-dense (Bp, 128) tile;
    # padded label lanes carry bias -1e9 so they contribute ~0 to the logsumexp.
    out = jnp.dot(sents_vec.astype(bf16), wv, preferred_element_type=f32) + bv        # (Bp, 128)
    z = out - jnp.max(out, axis=1, keepdims=True)
    scores_ref[...] = z - jnp.log(jnp.sum(jnp.exp(z), axis=1, keepdims=True))


def pack_att_tsa_params(params):
    """One-time packing of all weights into two slabs (call once at parameter-load time)."""
    f32 = jnp.float32
    H = params["hidden2hidden_w"].shape[0]
    E = params["w_ih_f"].shape[1]
    Hd = H // 2
    G = 4 * H
    width = max(G, 128)

    def t2(w):
        return jnp.asarray(w, f32).T

    def pad_cols(a, w):
        return jnp.pad(jnp.asarray(a, f32), ((0, 0), (0, w - a.shape[1])))

    def gate_cols(wT, forward):
        # wT: (in, 4*Hd) PyTorch gate order [i, f, g, o] -> (in, 8*Hd) fused layout
        # [i_f i_b | f_f f_b | o_f o_b | g_f g_b]; other direction's columns are zero.
        i, f, g, o = (wT[:, 0:Hd], wT[:, Hd:2 * Hd], wT[:, 2 * Hd:3 * Hd], wT[:, 3 * Hd:4 * Hd])
        z = jnp.zeros_like(i)
        blocks = [i, z, f, z, o, z, g, z] if forward else [z, i, z, f, z, o, z, g]
        return jnp.concatenate(blocks, axis=1)

    wx_comb = jnp.concatenate([gate_cols(t2(params["w_ih_f"]), True),
                               gate_cols(t2(params["w_ih_b"]), False)], axis=0)      # (2E, G)
    whh_comb = jnp.concatenate([gate_cols(t2(params["w_hh_f"]), True),
                                gate_cols(t2(params["w_hh_b"]), False)], axis=0)     # (H, G)
    b_comb = (gate_cols(jnp.asarray(params["b_ih_f"] + params["b_hh_f"], f32).reshape(1, -1), True)
              + gate_cols(jnp.asarray(params["b_ih_b"] + params["b_hh_b"], f32).reshape(1, -1), False))

    w_slab = jnp.concatenate([
        pad_cols(wx_comb, width),
        pad_cols(whh_comb, width),
        pad_cols(t2(params["vec2label_w"]), width),        # (H, 3) -> lane padded
        pad_cols(t2(params["hidden2hidden_w"]), width),    # (H, H) -> lane padded
    ], axis=0).astype(jnp.bfloat16)                        # (2E + 3H, width) bf16

    bv_row = jnp.concatenate(
        [jnp.asarray(params["vec2label_b"], f32).reshape(1, 3),
         jnp.full((1, width - 3), -1e9, f32)], axis=1)
    v_slab = jnp.concatenate([
        pad_cols(b_comb, width),
        bv_row,
        pad_cols(jnp.asarray(params["hidden2hidden_b"], f32).reshape(1, -1), width),
        pad_cols(jnp.asarray(params["concatvec_w"][:, :H], f32).reshape(1, -1), width),
    ], axis=0)                                             # (4, width) f32

    return {"w_slab": w_slab, "v_slab": v_slab, "E": E, "H": H}


def att_tsa_compute_score(packed, sent, target=None):
    """sent: (B, L, E) batch-first, target: (B, E) (unused: its attention-logit
    contribution is constant over time per sentence and cancels in the softmax)."""
    del target
    B, L, E = sent.shape
    H = packed["H"]
    G = 4 * H
    Bp = ((B + 7) // 8) * 8

    # doubled, time-major sentence so one matmul feeds both LSTM directions:
    # row t*B+b = [x[b,t,:] | x[b,L-1-t,:]]
    sent_lbe = jnp.transpose(jnp.asarray(sent, jnp.float32), (1, 0, 2))      # (L, B, E)
    sent2 = jnp.concatenate([sent_lbe, sent_lbe[::-1]], axis=-1)
    sent2 = sent2.reshape(L * B, 2 * E).astype(jnp.bfloat16)

    kernel = functools.partial(_att_tsa_kernel, B=B, L=L, H=H)
    scores_pad = pl.pallas_call(
        kernel,
        out_shape=jax.ShapeDtypeStruct((Bp, 128), jnp.float32),
        in_specs=[pl.BlockSpec(memory_space=pltpu.MemorySpace.VMEM)] * 3,
        out_specs=pl.BlockSpec(memory_space=pltpu.MemorySpace.VMEM),
        scratch_shapes=[pltpu.VMEM((L * B, G), jnp.float32)],   # per-step gate slabs
    )(sent2, packed["w_slab"], packed["v_slab"])

    scores = scores_pad[:B, :3]          # log_softmax(output, dim=1)
    logits = jnp.exp(scores)             # softmax(output, dim=1)
    return scores, logits


def att_tsa_forward(packed, sent, target, label, lens):
    """Eval-mode forward: dropout(p=0.2, training=False) is identity; returns NLL loss."""
    # TODO(synk): pack_padded_sequence / pad_packed_sequence masking for variable lens
    # is not implemented; this assumes lens[i] == max_len for every sequence.
    del lens
    scores, _ = att_tsa_compute_score(packed, sent, target)
    picked = jnp.take_along_axis(scores, label[:, None].astype(jnp.int32), axis=1)
    return -jnp.mean(picked)


def init_params(key, E, H):
    Hd = H // 2
    keys = jax.random.split(key, 16)

    def lin(kw, kb, out_dim, in_dim):
        bound = 1.0 / math.sqrt(in_dim)
        w = jax.random.uniform(kw, (out_dim, in_dim), jnp.float32, -bound, bound)
        b = jax.random.uniform(kb, (out_dim,), jnp.float32, -bound, bound)
        return w, b

    std = 1.0 / math.sqrt(Hd)

    def lstm_w(k, shape):
        return jax.random.uniform(k, shape, jnp.float32, -std, std)

    params = {}
    params["w_ih_f"] = lstm_w(keys[0], (4 * Hd, E))
    params["w_hh_f"] = lstm_w(keys[1], (4 * Hd, Hd))
    params["b_ih_f"] = lstm_w(keys[2], (4 * Hd,))
    params["b_hh_f"] = lstm_w(keys[3], (4 * Hd,))
    params["w_ih_b"] = lstm_w(keys[4], (4 * Hd, E))
    params["w_hh_b"] = lstm_w(keys[5], (4 * Hd, Hd))
    params["b_ih_b"] = lstm_w(keys[6], (4 * Hd,))
    params["b_hh_b"] = lstm_w(keys[7], (4 * Hd,))
    params["hidden2hidden_w"], params["hidden2hidden_b"] = lin(keys[8], keys[9], H, H)
    params["target2hidden_w"], params["target2hidden_b"] = lin(keys[10], keys[11], H, E)
    params["concatvec_w"], params["concatvec_b"] = lin(keys[12], keys[13], 1, 2 * H)
    params["vec2label_w"], params["vec2label_b"] = lin(keys[14], keys[15], 3, H)
    return params


if __name__ == "__main__":
    # config: batch=2, max_len=8, embed_dim=32, l_hidden_size=32, l_num_layers=2
    B, L, E, H = 2, 8, 32, 32
    key = jax.random.PRNGKey(0)
    kp, ks, kt, kl = jax.random.split(key, 4)

    params = init_params(kp, E, H)
    packed = pack_att_tsa_params(params)     # one-time weight packing (hoisted off hot path)

    sent = jax.random.normal(ks, (B, L, E), jnp.float32)
    target = jax.random.normal(kt, (B, E), jnp.float32)
    label = jax.random.randint(kl, (B,), 0, 3, dtype=jnp.int32)
    lens = jnp.full((B,), L, dtype=jnp.int32)

    scores, logits = att_tsa_compute_score(packed, sent, target)
    loss = att_tsa_forward(packed, sent, target, label, lens)
    jax.block_until_ready((scores, logits, loss))

    assert scores.shape == (B, 3) and logits.shape == (B, 3)
    assert bool(jnp.all(jnp.isfinite(scores))) and bool(jnp.isfinite(loss))
    assert bool(jnp.allclose(jnp.sum(logits, axis=1), 1.0, atol=1e-4))
    print("KERNEL_OK")
</pallas_src>

<mosaic_0001>
module attributes {stable_mosaic.version = 11 : i64} {
  func.func @_att_tsa_kernel(%arg0: memref<16x64xbf16, #tpu.memory_space<vmem>>, %arg1: memref<160x128xbf16, #tpu.memory_space<vmem>>, %arg2: memref<4x128xf32, #tpu.memory_space<vmem>>, %arg3: memref<8x128xf32, #tpu.memory_space<vmem>>, %arg4: memref<16x128xf32, #tpu.memory_space<vmem>>) attributes {dimension_semantics = [], scalar_prefetch = 0 : i64, scratch_operands = 1 : i64, tpu.core_type = #tpu.core_type<tc>} {
    %c0 = arith.constant 0 : index
    %c0_0 = arith.constant 0 : index
    %0 = vector.load %arg1[%c0, %c0_0] : memref<160x128xbf16, #tpu.memory_space<vmem>>, vector<64x128xbf16>
    %c64 = arith.constant 64 : index
    %c0_1 = arith.constant 0 : index
    %1 = vector.load %arg1[%c64, %c0_1] : memref<160x128xbf16, #tpu.memory_space<vmem>>, vector<32x128xbf16>
    %c96 = arith.constant 96 : index
    %c0_2 = arith.constant 0 : index
    %2 = vector.load %arg1[%c96, %c0_2] : memref<160x128xbf16, #tpu.memory_space<vmem>>, vector<32x128xbf16>
    %c128 = arith.constant 128 : index
    %c0_3 = arith.constant 0 : index
    %3 = vector.load %arg1[%c128, %c0_3] : memref<160x128xbf16, #tpu.memory_space<vmem>>, vector<32x32xbf16>
    %c0_4 = arith.constant 0 : index
    %c0_5 = arith.constant 0 : index
    %4 = vector.load %arg2[%c0_4, %c0_5] : memref<4x128xf32, #tpu.memory_space<vmem>>, vector<1x128xf32>
    %c1 = arith.constant 1 : index
    %c0_6 = arith.constant 0 : index
    %5 = vector.load %arg2[%c1, %c0_6] : memref<4x128xf32, #tpu.memory_space<vmem>>, vector<1x128xf32>
    %c2 = arith.constant 2 : index
    %c0_7 = arith.constant 0 : index
    %6 = vector.load %arg2[%c2, %c0_7] : memref<4x128xf32, #tpu.memory_space<vmem>>, vector<1x32xf32>
    %c3 = arith.constant 3 : index
    %c0_8 = arith.constant 0 : index
    %7 = vector.load %arg2[%c3, %c0_8] : memref<4x128xf32, #tpu.memory_space<vmem>>, vector<1x32xf32>
    %c0_9 = arith.constant 0 : index
    %c0_10 = arith.constant 0 : index
    %8 = vector.load %arg0[%c0_9, %c0_10] : memref<16x64xbf16, #tpu.memory_space<vmem>>, vector<16x64xbf16>
    %cst = arith.constant dense<0.000000e+00> : vector<16x128xf32>
    %9 = tpu.matmul %8, %0, %cst {dimension_numbers = #tpu.dot_dimension_numbers<[1], [0], [0], [1], [0, 0, 1, 1], [], []>} : vector<16x64xbf16>, vector<64x128xbf16>, vector<16x128xf32> -> vector<16x128xf32>
    %10 = vector.broadcast %4 : vector<1x128xf32> to vector<16x128xf32>
    %11 = arith.addf %9, %10 : vector<16x128xf32>
    %c0_11 = arith.constant 0 : index
    %c0_12 = arith.constant 0 : index
    %12 = vector.load %arg4[%c0_11, %c0_12] : memref<16x128xf32, #tpu.memory_space<vmem>>, vector<16x128xf32>
    tpu.vector_store %arg4[%c0_11, %c0_12], %11 {strides = array<i32>} : memref<16x128xf32, #tpu.memory_space<vmem>>, vector<16x128xf32>,
    %cst_13 = arith.constant 0.000000e+00 : f32
    %13 = vector.broadcast %cst_13 : f32 to vector<2x32xf32>
    %cst_14 = arith.constant 0.000000e+00 : f32
    %14 = vector.broadcast %cst_14 : f32 to vector<2x32xf32>
    %c0_15 = arith.constant 0 : index
    %c0_16 = arith.constant 0 : index
    %15 = vector.load %arg4[%c0_15, %c0_16] : memref<16x128xf32, #tpu.memory_space<vmem>>, vector<2x128xf32>
    %16 = arith.truncf %13 : vector<2x32xf32> to vector<2x32xbf16>
    %cst_17 = arith.constant dense<0.000000e+00> : vector<2x128xf32>
    %17 = tpu.matmul %16, %1, %cst_17 {dimension_numbers = #tpu.dot_dimension_numbers<[1], [0], [0], [1], [0, 0, 1, 1], [], []>} : vector<2x32xbf16>, vector<32x128xbf16>, vector<2x128xf32> -> vector<2x128xf32>
    %18 = arith.addf %15, %17 : vector<2x128xf32>
    %19 = vector.extract_strided_slice %18 {offsets = [0, 0], sizes = [2, 96], strides = [1, 1]} : vector<2x128xf32> to vector<2x96xf32>
    %20 = arith.negf %19 : vector<2x96xf32>
    %21 = math.exp %20 : vector<2x96xf32>
    %cst_18 = arith.constant 1.000000e+00 : f32
    %22 = vector.broadcast %cst_18 : f32 to vector<2x96xf32>
    %23 = arith.addf %22, %21 : vector<2x96xf32>
    %24 = arith.divf %22, %23 : vector<2x96xf32>
    %25 = vector.extract_strided_slice %18 {offsets = [0, 96], sizes = [2, 32], strides = [1, 1]} : vector<2x128xf32> to vector<2x32xf32>
    %26 = math.tanh %25 : vector<2x32xf32>
    %27 = vector.extract_strided_slice %24 {offsets = [0, 32], sizes = [2, 32], strides = [1, 1]} : vector<2x96xf32> to vector<2x32xf32>
    %28 = arith.mulf %27, %14 : vector<2x32xf32>
    %29 = vector.extract_strided_slice %24 {offsets = [0, 0], sizes = [2, 32], strides = [1, 1]} : vector<2x96xf32> to vector<2x32xf32>
    %30 = arith.mulf %29, %26 : vector<2x32xf32>
    %31 = arith.addf %28, %30 : vector<2x32xf32>
    %32 = vector.extract_strided_slice %24 {offsets = [0, 64], sizes = [2, 32], strides = [1, 1]} : vector<2x96xf32> to vector<2x32xf32>
    %33 = math.tanh %31 : vector<2x32xf32>
    %34 = arith.mulf %32, %33 : vector<2x32xf32>
    %35 = vector.extract_strided_slice %34 {offsets = [0, 0], sizes = [2, 16], strides = [1, 1]} : vector<2x32xf32> to vector<2x16xf32>
    %36 = vector.extract_strided_slice %34 {offsets = [0, 16], sizes = [2, 16], strides = [1, 1]} : vector<2x32xf32> to vector<2x16xf32>
    %c2_19 = arith.constant 2 : index
    %c0_20 = arith.constant 0 : index
    %37 = vector.load %arg4[%c2_19, %c0_20] : memref<16x128xf32, #tpu.memory_space<vmem>>, vector<2x128xf32>
    %38 = arith.truncf %34 : vector<2x32xf32> to vector<2x32xbf16>
    %cst_21 = arith.constant dense<0.000000e+00> : vector<2x128xf32>
    %39 = tpu.matmul %38, %1, %cst_21 {dimension_numbers = #tpu.dot_dimension_numbers<[1], [0], [0], [1], [0, 0, 1, 1], [], []>} : vector<2x32xbf16>, vector<32x128xbf16>, vector<2x128xf32> -> vector<2x128xf32>
    %40 = arith.addf %37, %39 : vector<2x128xf32>
    %41 = vector.extract_strided_slice %40 {offsets = [0, 0], sizes = [2, 96], strides = [1, 1]} : vector<2x128xf32> to vector<2x96xf32>
    %42 = arith.negf %41 : vector<2x96xf32>
    %43 = math.exp %42 : vector<2x96xf32>
    %cst_22 = arith.constant 1.000000e+00 : f32
    %44 = vector.broadcast %cst_22 : f32 to vector<2x96xf32>
    %45 = arith.addf %44, %43 : vector<2x96xf32>
    %46 = arith.divf %44, %45 : vector<2x96xf32>
    %47 = vector.extract_strided_slice %40 {offsets = [0, 96], sizes = [2, 32], strides = [1, 1]} : vector<2x128xf32> to vector<2x32xf32>
    %48 = math.tanh %47 : vector<2x32xf32>
    %49 = vector.extract_strided_slice %46 {offsets = [0, 32], sizes = [2, 32], strides = [1, 1]} : vector<2x96xf32> to vector<2x32xf32>
    %50 = arith.mulf %49, %31 : vector<2x32xf32>
    %51 = vector.extract_strided_slice %46 {offsets = [0, 0], sizes = [2, 32], strides = [1, 1]} : vector<2x96xf32> to vector<2x32xf32>
    %52 = arith.mulf %51, %48 : vector<2x32xf32>
    %53 = arith.addf %50, %52 : vector<2x32xf32>
    %54 = vector.extract_strided_slice %46 {offsets = [0, 64], sizes = [2, 32], strides = [1, 1]} : vector<2x96xf32> to vector<2x32xf32>
    %55 = math.tanh %53 : vector<2x32xf32>
    %56 = arith.mulf %54, %55 : vector<2x32xf32>
    %57 = vector.extract_strided_slice %56 {offsets = [0, 0], sizes = [2, 16], strides = [1, 1]} : vector<2x32xf32> to vector<2x16xf32>
    %58 = vector.extract_strided_slice %56 {offsets = [0, 16], sizes = [2, 16], strides = [1, 1]} : vector<2x32xf32> to vector<2x16xf32>
    %c4 = arith.constant 4 : index
    %c0_23 = arith.constant 0 : index
    %59 = vector.load %arg4[%c4, %c0_23] : memref<16x128xf32, #tpu.memory_space<vmem>>, vector<2x128xf32>
    %60 = arith.truncf %56 : vector<2x32xf32> to vector<2x32xbf16>
    %cst_24 = arith.constant dense<0.000000e+00> : vector<2x128xf32>
    %61 = tpu.matmul %60, %1, %cst_24 {dimension_numbers = #tpu.dot_dimension_numbers<[1], [0], [0], [1], [0, 0, 1, 1], [], []>} : vector<2x32xbf16>, vector<32x128xbf16>, vector<2x128xf32> -> vector<2x128xf32>
    %62 = arith.addf %59, %61 : vector<2x128xf32>
    %63 = vector.extract_strided_slice %62 {offsets = [0, 0], sizes = [2, 96], strides = [1, 1]} : vector<2x128xf32> to vector<2x96xf32>
    %64 = arith.negf %63 : vector<2x96xf32>
    %65 = math.exp %64 : vector<2x96xf32>
    %cst_25 = arith.constant 1.000000e+00 : f32
    %66 = vector.broadcast %cst_25 : f32 to vector<2x96xf32>
    %67 = arith.addf %66, %65 : vector<2x96xf32>
    %68 = arith.divf %66, %67 : vector<2x96xf32>
    %69 = vector.extract_strided_slice %62 {offsets = [0, 96], sizes = [2, 32], strides = [1, 1]} : vector<2x128xf32> to vector<2x32xf32>
    %70 = math.tanh %69 : vector<2x32xf32>
    %71 = vector.extract_strided_slice %68 {offsets = [0, 32], sizes = [2, 32], strides = [1, 1]} : vector<2x96xf32> to vector<2x32xf32>
    %72 = arith.mulf %71, %53 : vector<2x32xf32>
    %73 = vector.extract_strided_slice %68 {offsets = [0, 0], sizes = [2, 32], strides = [1, 1]} : vector<2x96xf32> to vector<2x32xf32>
    %74 = arith.mulf %73, %70 : vector<2x32xf32>
    %75 = arith.addf %72, %74 : vector<2x32xf32>
    %76 = vector.extract_strided_slice %68 {offsets = [0, 64], sizes = [2, 32], strides = [1, 1]} : vector<2x96xf32> to vector<2x32xf32>
    %77 = math.tanh %75 : vector<2x32xf32>
    %78 = arith.mulf %76, %77 : vector<2x32xf32>
    %79 = vector.extract_strided_slice %78 {offsets = [0, 0], sizes = [2, 16], strides = [1, 1]} : vector<2x32xf32> to vector<2x16xf32>
    %80 = vector.extract_strided_slice %78 {offsets = [0, 16], sizes = [2, 16], strides = [1, 1]} : vector<2x32xf32> to vector<2x16xf32>
    %c6 = arith.constant 6 : index
    %c0_26 = arith.constant 0 : index
    %81 = vector.load %arg4[%c6, %c0_26] : memref<16x128xf32, #tpu.memory_space<vmem>>, vector<2x128xf32>
    %82 = arith.truncf %78 : vector<2x32xf32> to vector<2x32xbf16>
    %cst_27 = arith.constant dense<0.000000e+00> : vector<2x128xf32>
    %83 = tpu.matmul %82, %1, %cst_27 {dimension_numbers = #tpu.dot_dimension_numbers<[1], [0], [0], [1], [0, 0, 1, 1], [], []>} : vector<2x32xbf16>, vector<32x128xbf16>, vector<2x128xf32> -> vector<2x128xf32>
    %84 = arith.addf %81, %83 : vector<2x128xf32>
    %85 = vector.extract_strided_slice %84 {offsets = [0, 0], sizes = [2, 96], strides = [1, 1]} : vector<2x128xf32> to vector<2x96xf32>
    %86 = arith.negf %85 : vector<2x96xf32>
    %87 = math.exp %86 : vector<2x96xf32>
    %cst_28 = arith.constant 1.000000e+00 : f32
    %88 = vector.broadcast %cst_28 : f32 to vector<2x96xf32>
    %89 = arith.addf %88, %87 : vector<2x96xf32>
    %90 = arith.divf %88, %89 : vector<2x96xf32>
    %91 = vector.extract_strided_slice %84 {offsets = [0, 96], sizes = [2, 32], strides = [1, 1]} : vector<2x128xf32> to vector<2x32xf32>
    %92 = math.tanh %91 : vector<2x32xf32>
    %93 = vector.extract_strided_slice %90 {offsets = [0, 32], sizes = [2, 32], strides = [1, 1]} : vector<2x96xf32> to vector<2x32xf32>
    %94 = arith.mulf %93, %75 : vector<2x32xf32>
    %95 = vector.extract_strided_slice %90 {offsets = [0, 0], sizes = [2, 32], strides = [1, 1]} : vector<2x96xf32> to vector<2x32xf32>
    %96 = arith.mulf %95, %92 : vector<2x32xf32>
    %97 = arith.addf %94, %96 : vector<2x32xf32>
    %98 = vector.extract_strided_slice %90 {offsets = [0, 64], sizes = [2, 32], strides = [1, 1]} : vector<2x96xf32> to vector<2x32xf32>
    %99 = math.tanh %97 : vector<2x32xf32>
    %100 = arith.mulf %98, %99 : vector<2x32xf32>
    %101 = vector.extract_strided_slice %100 {offsets = [0, 0], sizes = [2, 16], strides = [1, 1]} : vector<2x32xf32> to vector<2x16xf32>
    %102 = vector.extract_strided_slice %100 {offsets = [0, 16], sizes = [2, 16], strides = [1, 1]} : vector<2x32xf32> to vector<2x16xf32>
    %c8 = arith.constant 8 : index
    %c0_29 = arith.constant 0 : index
    %103 = vector.load %arg4[%c8, %c0_29] : memref<16x128xf32, #tpu.memory_space<vmem>>, vector<2x128xf32>
    %104 = arith.truncf %100 : vector<2x32xf32> to vector<2x32xbf16>
    %cst_30 = arith.constant dense<0.000000e+00> : vector<2x128xf32>
    %105 = tpu.matmul %104, %1, %cst_30 {dimension_numbers = #tpu.dot_dimension_numbers<[1], [0], [0], [1], [0, 0, 1, 1], [], []>} : vector<2x32xbf16>, vector<32x128xbf16>, vector<2x128xf32> -> vector<2x128xf32>
    %106 = arith.addf %103, %105 : vector<2x128xf32>
    %107 = vector.extract_strided_slice %106 {offsets = [0, 0], sizes = [2, 96], strides = [1, 1]} : vector<2x128xf32> to vector<2x96xf32>
    %108 = arith.negf %107 : vector<2x96xf32>
    %109 = math.exp %108 : vector<2x96xf32>
    %cst_31 = arith.constant 1.000000e+00 : f32
    %110 = vector.broadcast %cst_31 : f32 to vector<2x96xf32>
    %111 = arith.addf %110, %109 : vector<2x96xf32>
    %112 = arith.divf %110, %111 : vector<2x96xf32>
    %113 = vector.extract_strided_slice %106 {offsets = [0, 96], sizes = [2, 32], strides = [1, 1]} : vector<2x128xf32> to vector<2x32xf32>
    %114 = math.tanh %113 : vector<2x32xf32>
    %115 = vector.extract_strided_slice %112 {offsets = [0, 32], sizes = [2, 32], strides = [1, 1]} : vector<2x96xf32> to vector<2x32xf32>
    %116 = arith.mulf %115, %97 : vector<2x32xf32>
    %117 = vector.extract_strided_slice %112 {offsets = [0, 0], sizes = [2, 32], strides = [1, 1]} : vector<2x96xf32> to vector<2x32xf32>
    %118 = arith.mulf %117, %114 : vector<2x32xf32>
    %119 = arith.addf %116, %118 : vector<2x32xf32>
    %120 = vector.extract_strided_slice %112 {offsets = [0, 64], sizes = [2, 32], strides = [1, 1]} : vector<2x96xf32> to vector<2x32xf32>
    %121 = math.tanh %119 : vector<2x32xf32>
    %122 = arith.mulf %120, %121 : vector<2x32xf32>
    %123 = vector.extract_strided_slice %122 {offsets = [0, 0], sizes = [2, 16], strides = [1, 1]} : vector<2x32xf32> to vector<2x16xf32>
    %124 = vector.extract_strided_slice %122 {offsets = [0, 16], sizes = [2, 16], strides = [1, 1]} : vector<2x32xf32> to vector<2x16xf32>
    %c10 = arith.constant 10 : index
    %c0_32 = arith.constant 0 : index
    %125 = vector.load %arg4[%c10, %c0_32] : memref<16x128xf32, #tpu.memory_space<vmem>>, vector<2x128xf32>
    %126 = arith.truncf %122 : vector<2x32xf32> to vector<2x32xbf16>
    %cst_33 = arith.constant dense<0.000000e+00> : vector<2x128xf32>
    %127 = tpu.matmul %126, %1, %cst_33 {dimension_numbers = #tpu.dot_dimension_numbers<[1], [0], [0], [1], [0, 0, 1, 1], [], []>} : vector<2x32xbf16>, vector<32x128xbf16>, vector<2x128xf32> -> vector<2x128xf32>
    %128 = arith.addf %125, %127 : vector<2x128xf32>
    %129 = vector.extract_strided_slice %128 {offsets = [0, 0], sizes = [2, 96], strides = [1, 1]} : vector<2x128xf32> to vector<2x96xf32>
    %130 = arith.negf %129 : vector<2x96xf32>
    %131 = math.exp %130 : vector<2x96xf32>
    %cst_34 = arith.constant 1.000000e+00 : f32
    %132 = vector.broadcast %cst_34 : f32 to vector<2x96xf32>
    %133 = arith.addf %132, %131 : vector<2x96xf32>
    %134 = arith.divf %132, %133 : vector<2x96xf32>
    %135 = vector.extract_strided_slice %128 {offsets = [0, 96], sizes = [2, 32], strides = [1, 1]} : vector<2x128xf32> to vector<2x32xf32>
    %136 = math.tanh %135 : vector<2x32xf32>
    %137 = vector.extract_strided_slice %134 {offsets = [0, 32], sizes = [2, 32], strides = [1, 1]} : vector<2x96xf32> to vector<2x32xf32>
    %138 = arith.mulf %137, %119 : vector<2x32xf32>
    %139 = vector.extract_strided_slice %134 {offsets = [0, 0], sizes = [2, 32], strides = [1, 1]} : vector<2x96xf32> to vector<2x32xf32>
    %140 = arith.mulf %139, %136 : vector<2x32xf32>
    %141 = arith.addf %138, %140 : vector<2x32xf32>
    %142 = vector.extract_strided_slice %134 {offsets = [0, 64], sizes = [2, 32], strides = [1, 1]} : vector<2x96xf32> to vector<2x32xf32>
    %143 = math.tanh %141 : vector<2x32xf32>
    %144 = arith.mulf %142, %143 : vector<2x32xf32>
    %145 = vector.extract_strided_slice %144 {offsets = [0, 0], sizes = [2, 16], strides = [1, 1]} : vector<2x32xf32> to vector<2x16xf32>
    %146 = vector.extract_strided_slice %144 {offsets = [0, 16], sizes = [2, 16], strides = [1, 1]} : vector<2x32xf32> to vector<2x16xf32>
    %c12 = arith.constant 12 : index
    %c0_35 = arith.constant 0 : index
    %147 = vector.load %arg4[%c12, %c0_35] : memref<16x128xf32, #tpu.memory_space<vmem>>, vector<2x128xf32>
    %148 = arith.truncf %144 : vector<2x32xf32> to vector<2x32xbf16>
    %cst_36 = arith.constant dense<0.000000e+00> : vector<2x128xf32>
    %149 = tpu.matmul %148, %1, %cst_36 {dimension_numbers = #tpu.dot_dimension_numbers<[1], [0], [0], [1], [0, 0, 1, 1], [], []>} : vector<2x32xbf16>, vector<32x128xbf16>, vector<2x128xf32> -> vector<2x128xf32>
    %150 = arith.addf %147, %149 : vector<2x128xf32>
    %151 = vector.extract_strided_slice %150 {offsets = [0, 0], sizes = [2, 96], strides = [1, 1]} : vector<2x128xf32> to vector<2x96xf32>
    %152 = arith.negf %151 : vector<2x96xf32>
    %153 = math.exp %152 : vector<2x96xf32>
    %cst_37 = arith.constant 1.000000e+00 : f32
    %154 = vector.broadcast %cst_37 : f32 to vector<2x96xf32>
    %155 = arith.addf %154, %153 : vector<2x96xf32>
    %156 = arith.divf %154, %155 : vector<2x96xf32>
    %157 = vector.extract_strided_slice %150 {offsets = [0, 96], sizes = [2, 32], strides = [1, 1]} : vector<2x128xf32> to vector<2x32xf32>
    %158 = math.tanh %157 : vector<2x32xf32>
    %159 = vector.extract_strided_slice %156 {offsets = [0, 32], sizes = [2, 32], strides = [1, 1]} : vector<2x96xf32> to vector<2x32xf32>
    %160 = arith.mulf %159, %141 : vector<2x32xf32>
    %161 = vector.extract_strided_slice %156 {offsets = [0, 0], sizes = [2, 32], strides = [1, 1]} : vector<2x96xf32> to vector<2x32xf32>
    %162 = arith.mulf %161, %158 : vector<2x32xf32>
    %163 = arith.addf %160, %162 : vector<2x32xf32>
    %164 = vector.extract_strided_slice %156 {offsets = [0, 64], sizes = [2, 32], strides = [1, 1]} : vector<2x96xf32> to vector<2x32xf32>
    %165 = math.tanh %163 : vector<2x32xf32>
    %166 = arith.mulf %164, %165 : vector<2x32xf32>
    %167 = vector.extract_strided_slice %166 {offsets = [0, 0], sizes = [2, 16], strides = [1, 1]} : vector<2x32xf32> to vector<2x16xf32>
    %168 = vector.extract_strided_slice %166 {offsets = [0, 16], sizes = [2, 16], strides = [1, 1]} : vector<2x32xf32> to vector<2x16xf32>
    %c14 = arith.constant 14 : index
    %c0_38 = arith.constant 0 : index
    %169 = vector.load %arg4[%c14, %c0_38] : memref<16x128xf32, #tpu.memory_space<vmem>>, vector<2x128xf32>
    %170 = arith.truncf %166 : vector<2x32xf32> to vector<2x32xbf16>
    %cst_39 = arith.constant dense<0.000000e+00> : vector<2x128xf32>
    %171 = tpu.matmul %170, %1, %cst_39 {dimension_numbers = #tpu.dot_dimension_numbers<[1], [0], [0], [1], [0, 0, 1, 1], [], []>} : vector<2x32xbf16>, vector<32x128xbf16>, vector<2x128xf32> -> vector<2x128xf32>
    %172 = arith.addf %169, %171 : vector<2x128xf32>
    %173 = vector.extract_strided_slice %172 {offsets = [0, 0], sizes = [2, 96], strides = [1, 1]} : vector<2x128xf32> to vector<2x96xf32>
    %174 = arith.negf %173 : vector<2x96xf32>
    %175 = math.exp %174 : vector<2x96xf32>
    %cst_40 = arith.constant 1.000000e+00 : f32
    %176 = vector.broadcast %cst_40 : f32 to vector<2x96xf32>
    %177 = arith.addf %176, %175 : vector<2x96xf32>
    %178 = arith.divf %176, %177 : vector<2x96xf32>
    %179 = vector.extract_strided_slice %172 {offsets = [0, 96], sizes = [2, 32], strides = [1, 1]} : vector<2x128xf32> to vector<2x32xf32>
    %180 = math.tanh %179 : vector<2x32xf32>
    %181 = vector.extract_strided_slice %178 {offsets = [0, 32], sizes = [2, 32], strides = [1, 1]} : vector<2x96xf32> to vector<2x32xf32>
    %182 = arith.mulf %181, %163 : vector<2x32xf32>
    %183 = vector.extract_strided_slice %178 {offsets = [0, 0], sizes = [2, 32], strides = [1, 1]} : vector<2x96xf32> to vector<2x32xf32>
    %184 = arith.mulf %183, %180 : vector<2x32xf32>
    %185 = arith.addf %182, %184 : vector<2x32xf32>
    %186 = vector.extract_strided_slice %178 {offsets = [0, 64], sizes = [2, 32], strides = [1, 1]} : vector<2x96xf32> to vector<2x32xf32>
    %187 = math.tanh %185 : vector<2x32xf32>
    %188 = arith.mulf %186, %187 : vector<2x32xf32>
    %189 = vector.extract_strided_slice %188 {offsets = [0, 0], sizes = [2, 16], strides = [1, 1]} : vector<2x32xf32> to vector<2x16xf32>
    %190 = vector.extract_strided_slice %188 {offsets = [0, 16], sizes = [2, 16], strides = [1, 1]} : vector<2x32xf32> to vector<2x16xf32>
    %191 = tpu.concatenate %35, %57, %79, %101, %123, %145, %167, %189 in 0 : vector<2x16xf32>, vector<2x16xf32>, vector<2x16xf32>, vector<2x16xf32>, vector<2x16xf32>, vector<2x16xf32>, vector<2x16xf32>, vector<2x16xf32> -> vector<16x16xf32>
    %192 = tpu.concatenate %190, %168, %146, %124, %102, %80, %58, %36 in 0 : vector<2x16xf32>, vector<2x16xf32>, vector<2x16xf32>, vector<2x16xf32>, vector<2x16xf32>, vector<2x16xf32>, vector<2x16xf32>, vector<2x16xf32> -> vector<16x16xf32>
    %193 = tpu.concatenate %191, %192 in 1 : vector<16x16xf32>, vector<16x16xf32> -> vector<16x32xf32>
    %194 = arith.truncf %193 : vector<16x32xf32> to vector<16x32xbf16>
    %cst_41 = arith.constant dense<0.000000e+00> : vector<16x32xf32>
    %195 = tpu.matmul %194, %3, %cst_41 {dimension_numbers = #tpu.dot_dimension_numbers<[1], [0], [0], [1], [0, 0, 1, 1], [], []>} : vector<16x32xbf16>, vector<32x32xbf16>, vector<16x32xf32> -> vector<16x32xf32>
    %196 = vector.broadcast %6 : vector<1x32xf32> to vector<16x32xf32>
    %197 = arith.addf %195, %196 : vector<16x32xf32>
    %198 = math.tanh %197 : vector<16x32xf32>
    %199 = vector.broadcast %7 : vector<1x32xf32> to vector<16x32xf32>
    %200 = arith.mulf %198, %199 : vector<16x32xf32>
    %cst_42 = arith.constant dense<0.000000e+00> : vector<16xf32>
    %201 = vector.multi_reduction <add>, %200, %cst_42 [1] : vector<16x32xf32> to vector<16xf32>
    %202 = vector.shape_cast %201 : vector<16xf32> to vector<16x1xf32>
    %cst_43 = arith.constant dense<0xFF800000> : vector<1xf32>
    %203 = vector.multi_reduction <maximumf>, %202, %cst_43 [0] : vector<16x1xf32> to vector<1xf32>
    %204 = vector.shape_cast %203 : vector<1xf32> to vector<1x1xf32>
    %205 = vector.broadcast %204 : vector<1x1xf32> to vector<16x1xf32>
    %206 = arith.subf %202, %205 : vector<16x1xf32>
    %207 = math.exp %206 : vector<16x1xf32>
    %208 = tpu.iota {dimensions = array<i32: 0>} : vector<8x16xi32>
    %209 = tpu.iota {dimensions = array<i32: 1>} : vector<8x16xi32>
    %c1_i32 = arith.constant 1 : i32
    %210 = vector.broadcast %c1_i32 : i32 to vector<8x16xi32>
    %211 = arith.andi %208, %210 : vector<8x16xi32>
    %c1_i32_44 = arith.constant 1 : i32
    %212 = vector.broadcast %c1_i32_44 : i32 to vector<8x16xi32>
    %213 = arith.andi %209, %212 : vector<8x16xi32>
    %214 = arith.cmpi eq, %211, %213 : vector<8x16xi32>
    %cst_45 = arith.constant 1.000000e+00 : f32
    %cst_46 = arith.constant 0.000000e+00 : f32
    %215 = vector.broadcast %cst_45 : f32 to vector<8x16xf32>
    %216 = vector.broadcast %cst_46 : f32 to vector<8x16xf32>
    %217 = arith.select %214, %215, %216 : vector<8x16xi1>, vector<8x16xf32>
    %218 = arith.truncf %217 : vector<8x16xf32> to vector<8x16xbf16>
    %219 = vector.broadcast %207 : vector<16x1xf32> to vector<16x32xf32>
    %220 = arith.mulf %219, %193 : vector<16x32xf32>
    %221 = arith.truncf %220 : vector<16x32xf32> to vector<16x32xbf16>
    %cst_47 = arith.constant dense<0.000000e+00> : vector<8x32xf32>
    %222 = tpu.matmul %218, %221, %cst_47 {dimension_numbers = #tpu.dot_dimension_numbers<[1], [0], [0], [1], [0, 0, 1, 1], [], []>} : vector<8x16xbf16>, vector<16x32xbf16>, vector<8x32xf32> -> vector<8x32xf32>
    %223 = arith.truncf %207 : vector<16x1xf32> to vector<16x1xbf16>
    %cst_48 = arith.constant dense<0.000000e+00> : vector<8x1xf32>
    %224 = tpu.matmul %218, %223, %cst_48 {dimension_numbers = #tpu.dot_dimension_numbers<[1], [0], [0], [1], [0, 0, 1, 1], [], []>} : vector<8x16xbf16>, vector<16x1xbf16>, vector<8x1xf32> -> vector<8x1xf32>
    %225 = tpu.reciprocal %224 {approx = true} : vector<8x1xf32> -> vector<8x1xf32>
    %226 = vector.broadcast %225 : vector<8x1xf32> to vector<8x32xf32>
    %227 = arith.mulf %222, %226 : vector<8x32xf32>
    %228 = arith.truncf %227 : vector<8x32xf32> to vector<8x32xbf16>
    %cst_49 = arith.constant dense<0.000000e+00> : vector<8x128xf32>
    %229 = tpu.matmul %228, %2, %cst_49 {dimension_numbers = #tpu.dot_dimension_numbers<[1], [0], [0], [1], [0, 0, 1, 1], [], []>} : vector<8x32xbf16>, vector<32x128xbf16>, vector<8x128xf32> -> vector<8x128xf32>
    %230 = vector.broadcast %5 : vector<1x128xf32> to vector<8x128xf32>
    %231 = arith.addf %229, %230 : vector<8x128xf32>
    %cst_50 = arith.constant dense<0xFF800000> : vector<8xf32>
    %232 = vector.multi_reduction <maximumf>, %231, %cst_50 [1] : vector<8x128xf32> to vector<8xf32>
    %233 = vector.shape_cast %232 : vector<8xf32> to vector<8x1xf32>
    %234 = vector.broadcast %233 : vector<8x1xf32> to vector<8x128xf32>
    %235 = arith.subf %231, %234 : vector<8x128xf32>
    %236 = math.exp %235 : vector<8x128xf32>
    %cst_51 = arith.constant dense<0.000000e+00> : vector<8xf32>
    %237 = vector.multi_reduction <add>, %236, %cst_51 [1] : vector<8x128xf32> to vector<8xf32>
    %238 = vector.shape_cast %237 : vector<8xf32> to vector<8x1xf32>
    %239 = math.log %238 : vector<8x1xf32>
    %240 = vector.broadcast %239 : vector<8x1xf32> to vector<8x128xf32>
    %241 = arith.subf %235, %240 : vector<8x128xf32>
    %c0_52 = arith.constant 0 : index
    %c0_53 = arith.constant 0 : index
    %242 = vector.load %arg3[%c0_52, %c0_53] : memref<8x128xf32, #tpu.memory_space<vmem>>, vector<8x128xf32>
    tpu.vector_store %arg3[%c0_52, %c0_53], %241 {strides = array<i32>} : memref<8x128xf32, #tpu.memory_space<vmem>>, vector<8x128xf32>,
    return
  }
}

</mosaic_0001>

<bundles_post_ra>
// kernel: tpu_custom_call.1
= control target key start
LH: loop header
LB: loop body
LE: loop exit
PB: predicated region body
PF: predicated region fallthrough
CT: control target
= control target key end

     0   :  { %8 = vsyncpa [#allocation4], 0  ;;  %s1254_s0 = inlined_call_operand.hbm [shape: bf16[16,64], index: 0, kind: input, shape index: {}]   ;;  %s1255_s1 = inlined_call_operand.hbm [shape: bf16[160,128], index: 1, kind: input, shape index: {}]   ;;  %s1256_s2 = inlined_call_operand.hbm [shape: f32[4,128], index: 2, kind: input, shape index: {}]   ;;  %s1257_s3 = inlined_call_operand.hbm [shape: f32[8,128], index: 3, kind: output, shape index: {}]  }
   0x1   :  { %9 = vsyncpa [#allocation7], 0 }
   0x2   :  { %10 = vsyncpa [#allocation5], 0  ;;  %s28_s14 = sshll.u32 %s1255_s1, 4  ;;  %s1117_s15 = smov [#allocation6]   ;;  %s29_s14 = int_to_ptr.hbm [resolvable:$true] %s28_s14 }
   0x3   :  { %s30_s16 = sshll.u32 %s1117_s15, 4  ;;  %s15_s19 = sshll.u32 %s1254_s0, 4  ;;  %s31_s16 = int_to_ptr.vmem [resolvable:$true] %s30_s16  ;;  %s16_s19 = int_to_ptr.hbm [resolvable:$true] %s15_s19 }
   0x4   :  { %s1118_s20 = smov 64   ;;  %s1119_s21 = smov 4  }
   0x5   :  { %36 = dma.hbm_to_vmem [thread:$0]  %s29_s14, 1280, %s31_s16, [#allocation7], %s1118_s20, %s1118_s20, %s1119_s21  }
   0x6   :  { %s1120_s22 = smov [#allocation3]   ;;  %s42_s1 = sshll.u32 %s1256_s2, 4  ;;  %s43_s1 = int_to_ptr.hbm [resolvable:$true] %s42_s1 }
   0x7   :  { %s17_s23 = sshll.u32 %s1120_s22, 4  ;;  %s1121_s26 = smov [#allocation8]   ;;  %s18_s23 = int_to_ptr.vmem [resolvable:$true] %s17_s23 }
   0x8   :  { %23 = dma.hbm_to_vmem [thread:$0]  %s16_s19, 128, %s18_s23, [#allocation4], %s1118_s20, %s1118_s20, %s1119_s21  }
   0x9   :  { %s44_s27 = sshll.u32 %s1121_s26, 4  ;;  %s45_s27 = int_to_ptr.vmem [resolvable:$true] %s44_s27 }
   0xa   :  { %47 = dma.hbm_to_vmem [thread:$0]  %s43_s1, 64, %s45_s27, [#allocation7]  }
   0xb   :  { %1111 = dma.done.wait [#allocation4], 128  }
   0xc   :  { %1112 = vsyncadd [#allocation4], 4294967168 }
   0xd   :  { %1113 = dma.done.wait [#allocation7], 1344  }
   0xe   :  { %1114 = vsyncadd [#allocation7], 4294965952  ;;  %v1122_v0 = vmov 0   ;;  %v914_v1 = vld [vmem:[#allocation6 + $0x18] sm:$0xff]  ;;  %v916_v2 = vld [vmem:[#allocation6 + $0x28] sm:$0xff]  ;;  %vm117_vm0 = vcmask 523264  }
   0xf   :  { %931 = vset.pattern.permute.xlu1 %v1122_v0  ;;  %932 = vset.pattern.permute.xlu0 %v1122_v0  ;;  %v913_v3 = vld [vmem:[#allocation6 + $0x10] sm:$0xff]  ;;  %v915_v4 = vld [vmem:[#allocation6 + $0x20] sm:$0xff]  ;;  %v912_v5 = vld [vmem:[#allocation6 + $0x8] sm:$0xff]  ;;  %s1123_s0 = smov 32   ;;  %vm150_vm5 = vcmask 261120   ;;  %vm636_vm14 = vcmask 1041408  }
  0x10   :  { %125 = vmatpush.bf16.msra.mxu0 %v914_v1  ;;  %160 = vmatpush.bf16.msra.mxu1 %v916_v2  ;;  %v911_v6 = vld [vmem:[#allocation6] sm:$0xff]  ;;  %v921_v7 = vld [vmem:[#allocation3] sm:$0xff]  ;;  %v933_v9 = vld [vmem:[#allocation8] ss:$0 sm:$0xff]  ;;  %vm638_vm15 = vcmask 1043456   ;;  %s1125_s2 = smov [#allocation9]  }
  0x11   :  { %219 = vmatpush.bf16.msra.mxu2 %v916_v2  ;;  %278 = vmatpush.bf16.msra.mxu3 %v916_v2  ;;  %s834_s28 = sshll.u32 %s1125_s2, 4  ;;  %s836_s4 = sshll.u32 %s1257_s3, 4  ;;  %s835_s28 = int_to_ptr.vmem [resolvable:$true] %s834_s28  ;;  %s837_s4 = int_to_ptr.hbm [resolvable:$true] %s836_s4 }
  0x14   :  { %126 = vmatpush.bf16.msra.mxu0 %v913_v3  ;;  %161 = vmatpush.bf16.msra.mxu1 %v915_v4 }
  0x15   :  { %220 = vmatpush.bf16.msra.mxu2 %v915_v4  ;;  %279 = vmatpush.bf16.msra.mxu3 %v915_v4 }
  0x17   :  { %162 = vmatmul.bf16.vlgmr.msra.gmra.mxu1 %v1122_v0 }
  0x18   :  { %337 = vmatpush.bf16.msrb.mxu1 %v916_v2  ;;  %127 = vmatpush.bf16.msra.mxu0 %v912_v5 }
  0x19   :  { %396 = vmatpush.bf16.msrb.mxu2 %v916_v2  ;;  %455 = vmatpush.bf16.msrb.mxu3 %v916_v2 }
  0x1c   :  { %338 = vmatpush.bf16.msrb.mxu1 %v915_v4  ;;  %128 = vmatpush.bf16.msra.mxu0 %v911_v6 }
  0x1d   :  { %397 = vmatpush.bf16.msrb.mxu2 %v915_v4  ;;  %456 = vmatpush.bf16.msrb.mxu3 %v915_v4 }
  0x1f   :  { %867 = vmatmul.msk.bf16.vlgmr.msra.gmra.mxu0 %vm117_vm0, %v921_v7 }
  0x20   :  { %573 = vmatpush.bf16.msra.mxu1 %v916_v2  ;;  %514 = vmatpush.bf16.msrb.mxu0 %v916_v2 }
  0x24   :  { %574 = vmatpush.bf16.msra.mxu1 %v915_v4  ;;  %515 = vmatpush.bf16.msrb.mxu0 %v915_v4 }
  0x94   :  { %v163_v8 = vpop.f32.mrf.mxu1 }
  0x9c   :  { %v130_v10 = vpop.f32.mrf.mxu0  ;;  %v165_v12 = vpop.f32.mrf.mxu1 }
  0x9d   :  { %v131_v11 = vadd.f32 %v933_v9, %v130_v10 }
  0x9f   :  { %135 = vst [vmem:[#allocation2] sm:$0xff] %v131_v11 }
  0xa4   :  { %v132_v13 = vpop.f32.mrf.mxu0 }
  0xa5   :  { %v133_v14 = vadd.f32 %v933_v9, %v132_v13 }
  0xa6   :  { %v137_v15 = vld [vmem:[#allocation2] sm:$0x3]  ;;  %v205_v41 = vld [vmem:[#allocation2 + $0x2] sm:$0x3]  ;;  %v264_v5 = vld [vmem:[#allocation2 + $0x4] sm:$0x3] }
  0xa7   :  { %v167_v16 = vadd.f32 %v163_v8, %v137_v15  ;;  %136 = vst [vmem:[#allocation2 + $0x8] sm:$0xff] %v133_v14 }
  0xa9   :  { %937 = vtanh.f32 %v167_v16  ;;  %v876_v18 = vmul.f32 -1.442695, %v167_v16 }
  0xab   :  { %939 = vpow2.f32 %v876_v18 }
  0xaf   :  { %v938_v17 = vpop.eup %937 }
  0xb0   :  { %190 = vrot.lane.b32.xlu0 %v938_v17, %s1123_s0 }
  0xb1   :  { %v940_v19 = vpop.eup %939 }
  0xb2   :  { %v171_v20 = vadd.f32 1.0, %v940_v19 }
  0xb4   :  { %941 = vrcp.f32 %v171_v20  ;;  %v183_v26 = vand.u32 2147483648, %v171_v20  ;;  %vm177_vm2 = vweird.f32 %v171_v20  ;;  %v181_v27 = vand.u32 2147483647, %v171_v20 }
  0xb6   :  { %v184_v29 = vor.u32 1.1754944e-38, %v183_v26  ;;  %vm182_vm4 = vcmp.eq.f32.partialorder %v181_v27, 8.507059e+37 }
  0xba   :  { %v942_v21 = vpop.eup %941 }
  0xbb   :  { %v173_v22 = vmul.f32 %v942_v21, %v171_v20  ;;  %vm178_vm1 = vweird.f32 %v942_v21 }
  0xbc   :  { %vm179_vm3 = vmor %vm177_vm2, %vm178_vm1 }
  0xbd   :  { %v174_v23 = vsub.f32 1.0, %v173_v22 }
  0xbf   :  { %v175_v24 = vmul.f32 %v942_v21, %v174_v23 }
  0xc1   :  { %v176_v25 = vadd.f32 %v942_v21, %v175_v24 }
  0xc3   :  { %v180_v28 = vsel %vm179_vm3, %v942_v21, %v176_v25 }
  0xc4   :  { %v185_v31 = vsel %vm182_vm4, %v184_v29, %v180_v28  ;;  %vm640_vm4 = vcmask 1045504  }
  0xc5   :  { %v188_v33 = vmul.f32 0.0, %v185_v31 }
 0x122   :  { %v191_v30 = vpop.permute.xlu0 %190 }
 0x123   :  { %v193_v32 = vmul.f32 %v191_v30, %v185_v31 }
 0x125   :  { %195 = vrot.lane.b32.xlu0 %v193_v32, %s1123_s0 }
 0x197   :  { %v196_v34 = vpop.permute.xlu0 %195 }
 0x198   :  { %v198_v35 = vadd.f32 %v196_v34, %v188_v33 }
 0x19a   :  { %943 = vtanh.f32 %v198_v35 }
 0x1a0   :  { %v944_v36 = vpop.eup %943 }
 0x1a1   :  { %201 = vrot.lane.b32.xlu1 %v944_v36, %s1123_s0 }
 0x213   :  { %v202_v37 = vpop.permute.xlu1 %201 }
 0x214   :  { %v1162_v38 = vmul.f32 %v202_v37, %v185_v31  ;;  %v323_v37 = vld [vmem:[#allocation2 + $0x6] sm:$0x3] }
 0x216   :  { %v206_v39 = vpack.c.bf16 %v1162_v38, %v1162_v38 }
 0x218   :  { %208 = vrot.lane.b32.xlu1 %v206_v39, %s1118_s20 }
 0x28a   :  { %v209_v40 = vpop.permute.xlu1 %208 }
 0x28b   :  { %877 = vmatmul.msk.bf16.vlgmr.msra.gmra.mxu2 %vm150_vm5, %v209_v40 }
 0x30e   :  { %v222_v42 = vpop.f32.mrf.mxu2 }
 0x30f   :  { %v226_v43 = vadd.f32 %v222_v42, %v205_v41 }
 0x311   :  { %945 = vtanh.f32 %v226_v43  ;;  %v878_v46 = vmul.f32 -1.442695, %v226_v43 }
 0x313   :  { %947 = vpow2.f32 %v878_v46 }
 0x316   :  { %v224_v44 = vpop.f32.mrf.mxu2 }
 0x317   :  { %v946_v45 = vpop.eup %945 }
 0x318   :  { %249 = vrot.lane.b32.xlu2 %v946_v45, %s1123_s0 }
 0x319   :  { %v948_v47 = vpop.eup %947 }
 0x31a   :  { %v230_v48 = vadd.f32 1.0, %v948_v47 }
 0x31c   :  { %949 = vrcp.f32 %v230_v48  ;;  %v242_v54 = vand.u32 2147483648, %v230_v48  ;;  %vm236_vm7 = vweird.f32 %v230_v48  ;;  %v240_v55 = vand.u32 2147483647, %v230_v48 }
 0x31e   :  { %v243_v57 = vor.u32 1.1754944e-38, %v242_v54  ;;  %vm241_vm9 = vcmp.eq.f32.partialorder %v240_v55, 8.507059e+37 }
 0x322   :  { %v950_v49 = vpop.eup %949 }
 0x323   :  { %v232_v50 = vmul.f32 %v950_v49, %v230_v48  ;;  %vm237_vm6 = vweird.f32 %v950_v49 }
 0x324   :  { %vm238_vm8 = vmor %vm236_vm7, %vm237_vm6 }
 0x325   :  { %v233_v51 = vsub.f32 1.0, %v232_v50 }
 0x327   :  { %v234_v52 = vmul.f32 %v950_v49, %v233_v51 }
 0x329   :  { %v235_v53 = vadd.f32 %v950_v49, %v234_v52 }
 0x32b   :  { %v239_v56 = vsel %vm238_vm8, %v950_v49, %v235_v53 }
 0x32c   :  { %v244_v59 = vsel %vm241_vm9, %v243_v57, %v239_v56 }
 0x32d   :  { %v247_v61 = vmul.f32 %v244_v59, %v198_v35 }
 0x372   :  { %v250_v58 = vpop.permute.xlu2 %249 }
 0x373   :  { %v252_v60 = vmul.f32 %v250_v58, %v244_v59 }
 0x375   :  { %254 = vrot.lane.b32.xlu2 %v252_v60, %s1123_s0 }
 0x3cf   :  { %v255_v62 = vpop.permute.xlu2 %254 }
 0x3d0   :  { %v257_v63 = vadd.f32 %v255_v62, %v247_v61 }
 0x3d2   :  { %951 = vtanh.f32 %v257_v63 }
 0x3d8   :  { %v952_v0 = vpop.eup %951 }
 0x3d9   :  { %260 = vrot.lane.b32.xlu0 %v952_v0, %s1123_s0 }
 0x44b   :  { %v261_v1 = vpop.permute.xlu0 %260 }
 0x44c   :  { %v1171_v2 = vmul.f32 %v261_v1, %v244_v59 }
 0x44e   :  { %v265_v3 = vpack.c.bf16 %v1171_v2, %v1171_v2  ;;  %v619_v29 = vrot.slane %v1171_v2, 6  ;;  %v654_v1 = vrot.slane %v1171_v2, 4 }
 0x450   :  { %267 = vrot.lane.b32.xlu1 %v265_v3, %s1118_s20  ;;  %v637_v34 = vsel %vm636_vm14, %v1162_v38, %v619_v29 }
 0x4c2   :  { %v268_v4 = vpop.permute.xlu1 %267 }
 0x4c3   :  { %879 = vmatmul.msk.bf16.vlgmr.msra.gmra.mxu3 %vm150_vm5, %v268_v4 }
 0x546   :  { %v281_v6 = vpop.f32.mrf.mxu3 }
 0x547   :  { %v285_v7 = vadd.f32 %v281_v6, %v264_v5 }
 0x549   :  { %953 = vtanh.f32 %v285_v7  ;;  %v880_v10 = vmul.f32 -1.442695, %v285_v7 }
 0x54b   :  { %955 = vpow2.f32 %v880_v10 }
 0x54e   :  { %v283_v8 = vpop.f32.mrf.mxu3 }
 0x54f   :  { %v954_v9 = vpop.eup %953 }
 0x550   :  { %308 = vrot.lane.b32.xlu2 %v954_v9, %s1123_s0  ;;  %v382_v9 = vld [vmem:[#allocation2 + $0x8] sm:$0x3] }
 0x551   :  { %v956_v11 = vpop.eup %955 }
 0x552   :  { %v289_v12 = vadd.f32 1.0, %v956_v11 }
 0x554   :  { %957 = vrcp.f32 %v289_v12  ;;  %v301_v18 = vand.u32 2147483648, %v289_v12  ;;  %vm295_vm11 = vweird.f32 %v289_v12  ;;  %v299_v19 = vand.u32 2147483647, %v289_v12 }
 0x556   :  { %v302_v21 = vor.u32 1.1754944e-38, %v301_v18  ;;  %vm300_vm13 = vcmp.eq.f32.partialorder %v299_v19, 8.507059e+37 }
 0x55a   :  { %v958_v13 = vpop.eup %957 }
 0x55b   :  { %v291_v14 = vmul.f32 %v958_v13, %v289_v12  ;;  %vm296_vm10 = vweird.f32 %v958_v13 }
 0x55c   :  { %vm297_vm12 = vmor %vm295_vm11, %vm296_vm10 }
 0x55d   :  { %v292_v15 = vsub.f32 1.0, %v291_v14 }
 0x55f   :  { %v293_v16 = vmul.f32 %v958_v13, %v292_v15 }
 0x561   :  { %v294_v17 = vadd.f32 %v958_v13, %v293_v16 }
 0x563   :  { %v298_v20 = vsel %vm297_vm12, %v958_v13, %v294_v17 }
 0x564   :  { %v303_v23 = vsel %vm300_vm13, %v302_v21, %v298_v20 }
 0x565   :  { %v306_v25 = vmul.f32 %v303_v23, %v257_v63 }
 0x5aa   :  { %v309_v22 = vpop.permute.xlu2 %308 }
 0x5ab   :  { %v311_v24 = vmul.f32 %v309_v22, %v303_v23 }
 0x5ad   :  { %313 = vrot.lane.b32.xlu0 %v311_v24, %s1123_s0 }
 0x61f   :  { %v314_v26 = vpop.permute.xlu0 %313 }
 0x620   :  { %v316_v27 = vadd.f32 %v314_v26, %v306_v25 }
 0x622   :  { %959 = vtanh.f32 %v316_v27 }
 0x628   :  { %v960_v28 = vpop.eup %959 }
 0x629   :  { %319 = vrot.lane.b32.xlu1 %v960_v28, %s1123_s0 }
 0x69b   :  { %v320_v30 = vpop.permute.xlu1 %319 }
 0x69c   :  { %v322_v31 = vmul.f32 %v320_v30, %v303_v23 }
 0x69e   :  { %v622_v32 = vrot.slane %v322_v31, 4  ;;  %v324_v33 = vpack.c.bf16 %v322_v31, %v322_v31  ;;  %v652_v63 = vrot.slane %v322_v31, 6 }
 0x6a0   :  { %326 = vrot.lane.b32.xlu2 %v324_v33, %s1118_s20  ;;  %v639_v35 = vsel %vm638_vm15, %v637_v34, %v622_v32 }
 0x6fa   :  { %v327_v36 = vpop.permute.xlu2 %326 }
 0x6fb   :  { %881 = vmatmul.msk.bf16.vlgmr.msrb.gmra.mxu1 %vm150_vm5, %v327_v36  ;;  %v441_v36 = vld [vmem:[#allocation2 + $0xa] sm:$0x3] }
 0x778   :  { %v340_v39 = vpop.f32.mrf.mxu1 }
 0x779   :  { %v344_v40 = vadd.f32 %v340_v39, %v323_v37 }
 0x77b   :  { %961 = vtanh.f32 %v344_v40  ;;  %v882_v43 = vmul.f32 -1.442695, %v344_v40 }
 0x77d   :  { %963 = vpow2.f32 %v882_v43 }
 0x780   :  { %v342_v41 = vpop.f32.mrf.mxu1 }
 0x781   :  { %v962_v42 = vpop.eup %961 }
 0x782   :  { %367 = vrot.lane.b32.xlu0 %v962_v42, %s1123_s0 }
 0x783   :  { %v964_v44 = vpop.eup %963 }
 0x784   :  { %v348_v45 = vadd.f32 1.0, %v964_v44 }
 0x786   :  { %965 = vrcp.f32 %v348_v45  ;;  %v360_v51 = vand.u32 2147483648, %v348_v45  ;;  %vm354_vm1 = vweird.f32 %v348_v45  ;;  %v358_v52 = vand.u32 2147483647, %v348_v45 }
 0x788   :  { %v361_v54 = vor.u32 1.1754944e-38, %v360_v51  ;;  %vm359_vm3 = vcmp.eq.f32.partialorder %v358_v52, 8.507059e+37 }
 0x78c   :  { %v966_v46 = vpop.eup %965 }
 0x78d   :  { %v350_v47 = vmul.f32 %v966_v46, %v348_v45  ;;  %vm355_vm0 = vweird.f32 %v966_v46 }
 0x78e   :  { %vm356_vm2 = vmor %vm354_vm1, %vm355_vm0 }
 0x78f   :  { %v351_v48 = vsub.f32 1.0, %v350_v47 }
 0x791   :  { %v352_v49 = vmul.f32 %v966_v46, %v351_v48 }
 0x793   :  { %v353_v50 = vadd.f32 %v966_v46, %v352_v49 }
 0x795   :  { %v357_v53 = vsel %vm356_vm2, %v966_v46, %v353_v50 }
 0x796   :  { %v362_v56 = vsel %vm359_vm3, %v361_v54, %v357_v53 }
 0x797   :  { %v365_v58 = vmul.f32 %v362_v56, %v316_v27 }
 0x7f4   :  { %v368_v55 = vpop.permute.xlu0 %367 }
 0x7f5   :  { %v370_v57 = vmul.f32 %v368_v55, %v362_v56 }
 0x7f7   :  { %372 = vrot.lane.b32.xlu1 %v370_v57, %s1123_s0 }
 0x869   :  { %v373_v59 = vpop.permute.xlu1 %372 }
 0x86a   :  { %v375_v60 = vadd.f32 %v373_v59, %v365_v58 }
 0x86c   :  { %967 = vtanh.f32 %v375_v60 }
 0x872   :  { %v968_v61 = vpop.eup %967 }
 0x873   :  { %378 = vrot.lane.b32.xlu2 %v968_v61, %s1123_s0 }
 0x8cd   :  { %v379_v62 = vpop.permute.xlu2 %378 }
 0x8ce   :  { %v381_v0 = vmul.f32 %v379_v62, %v362_v56 }
 0x8d0   :  { %v383_v3 = vpack.c.bf16 %v381_v0, %v381_v0  ;;  %v625_v4 = vrot.slane %v381_v0, 2  ;;  %v662_v5 = vsel %vm636_vm14, %v381_v0, %v652_v63 }
 0x8d1   :  { %v1192_v6 = vsel %vm638_vm15, %v662_v5, %v654_v1  ;;  %v500_v1 = vld [vmem:[#allocation2 + $0xc] sm:$0x3] }
 0x8d2   :  { %385 = vrot.lane.b32.xlu0 %v383_v3, %s1118_s20  ;;  %v1196_v7 = vsel %vm640_vm4, %v639_v35, %v625_v4 }
 0x944   :  { %v386_v8 = vpop.permute.xlu0 %385 }
 0x945   :  { %883 = vmatmul.msk.bf16.vlgmr.msrb.gmra.mxu2 %vm150_vm5, %v386_v8 }
 0x9c8   :  { %v399_v10 = vpop.f32.mrf.mxu2 }
 0x9c9   :  { %v403_v11 = vadd.f32 %v399_v10, %v382_v9 }
 0x9cb   :  { %969 = vtanh.f32 %v403_v11  ;;  %v884_v13 = vmul.f32 -1.442695, %v403_v11 }
 0x9cd   :  { %971 = vpow2.f32 %v884_v13 }
 0x9d0   :  { %v401_v2 = vpop.f32.mrf.mxu2 }
 0x9d1   :  { %v970_v12 = vpop.eup %969 }
 0x9d2   :  { %426 = vrot.lane.b32.xlu1 %v970_v12, %s1123_s0 }
 0x9d3   :  { %v972_v14 = vpop.eup %971 }
 0x9d4   :  { %v407_v15 = vadd.f32 1.0, %v972_v14 }
 0x9d6   :  { %973 = vrcp.f32 %v407_v15  ;;  %v419_v21 = vand.u32 2147483648, %v407_v15  ;;  %vm413_vm7 = vweird.f32 %v407_v15  ;;  %v417_v22 = vand.u32 2147483647, %v407_v15 }
 0x9d8   :  { %v420_v24 = vor.u32 1.1754944e-38, %v419_v21  ;;  %vm418_vm9 = vcmp.eq.f32.partialorder %v417_v22, 8.507059e+37 }
 0x9dc   :  { %v974_v16 = vpop.eup %973 }
 0x9dd   :  { %v409_v17 = vmul.f32 %v974_v16, %v407_v15  ;;  %vm414_vm6 = vweird.f32 %v974_v16 }
 0x9de   :  { %vm415_vm8 = vmor %vm413_vm7, %vm414_vm6 }
 0x9df   :  { %v410_v18 = vsub.f32 1.0, %v409_v17 }
 0x9e1   :  { %v411_v19 = vmul.f32 %v974_v16, %v410_v18 }
 0x9e3   :  { %v412_v20 = vadd.f32 %v974_v16, %v411_v19 }
 0x9e5   :  { %v416_v23 = vsel %vm415_vm8, %v974_v16, %v412_v20 }
 0x9e6   :  { %v421_v26 = vsel %vm418_vm9, %v420_v24, %v416_v23 }
 0x9e7   :  { %v424_v28 = vmul.f32 %v421_v26, %v375_v60 }
 0xa44   :  { %v427_v25 = vpop.permute.xlu1 %426 }
 0xa45   :  { %v429_v27 = vmul.f32 %v427_v25, %v421_v26 }
 0xa47   :  { %431 = vrot.lane.b32.xlu2 %v429_v27, %s1123_s0 }
 0xaa1   :  { %v432_v29 = vpop.permute.xlu2 %431 }
 0xaa2   :  { %v434_v30 = vadd.f32 %v432_v29, %v424_v28 }
 0xaa4   :  { %975 = vtanh.f32 %v434_v30 }
 0xaaa   :  { %v976_v31 = vpop.eup %975 }
 0xaab   :  { %437 = vrot.lane.b32.xlu0 %v976_v31, %s1123_s0 }
 0xb1d   :  { %v438_v32 = vpop.permute.xlu0 %437 }
 0xb1e   :  { %v1202_v33 = vmul.f32 %v438_v32, %v421_v26 }
 0xb20   :  { %v442_v34 = vpack.c.bf16 %v1202_v33, %v1202_v33 }
 0xb22   :  { %444 = vrot.lane.b32.xlu1 %v442_v34, %s1118_s20 }
 0xb94   :  { %v445_v35 = vpop.permute.xlu1 %444 }
 0xb95   :  { %885 = vmatmul.msk.bf16.vlgmr.msrb.gmra.mxu3 %vm150_vm5, %v445_v35 }
 0xc18   :  { %v458_v37 = vpop.f32.mrf.mxu3 }
 0xc19   :  { %v462_v39 = vadd.f32 %v458_v37, %v441_v36  ;;  %v559_v36 = vld [vmem:[#allocation2 + $0xe] sm:$0x3] }
 0xc1b   :  { %977 = vtanh.f32 %v462_v39  ;;  %v886_v42 = vmul.f32 -1.442695, %v462_v39 }
 0xc1d   :  { %979 = vpow2.f32 %v886_v42  ;;  %v657_v42 = vrot.slane %v1162_v38, 2 }
 0xc20   :  { %v460_v40 = vpop.f32.mrf.mxu3 }
 0xc21   :  { %v978_v41 = vpop.eup %977 }
 0xc22   :  { %485 = vrot.lane.b32.xlu2 %v978_v41, %s1123_s0 }
 0xc23   :  { %v980_v43 = vpop.eup %979 }
 0xc24   :  { %v466_v44 = vadd.f32 1.0, %v980_v43  ;;  %v664_v43 = vsel %vm640_vm4, %v1192_v6, %v657_v42 }
 0xc26   :  { %981 = vrcp.f32 %v466_v44  ;;  %v478_v50 = vand.u32 2147483648, %v466_v44  ;;  %vm472_vm11 = vweird.f32 %v466_v44  ;;  %v476_v51 = vand.u32 2147483647, %v466_v44 }
 0xc28   :  { %v479_v53 = vor.u32 1.1754944e-38, %v478_v50  ;;  %vm477_vm13 = vcmp.eq.f32.partialorder %v476_v51, 8.507059e+37 }
 0xc2c   :  { %v982_v45 = vpop.eup %981 }
 0xc2d   :  { %v468_v46 = vmul.f32 %v982_v45, %v466_v44  ;;  %vm473_vm10 = vweird.f32 %v982_v45 }
 0xc2e   :  { %vm474_vm12 = vmor %vm472_vm11, %vm473_vm10  ;;  %vm681_vm10 = vcmask 130048  }
 0xc2f   :  { %v469_v47 = vsub.f32 1.0, %v468_v46 }
 0xc31   :  { %v470_v48 = vmul.f32 %v982_v45, %v469_v47 }
 0xc33   :  { %v471_v49 = vadd.f32 %v982_v45, %v470_v48 }
 0xc35   :  { %v475_v52 = vsel %vm474_vm12, %v982_v45, %v471_v49 }
 0xc36   :  { %v480_v55 = vsel %vm477_vm13, %v479_v53, %v475_v52 }
 0xc37   :  { %v483_v57 = vmul.f32 %v480_v55, %v434_v30 }
 0xc7c   :  { %v486_v54 = vpop.permute.xlu2 %485 }
 0xc7d   :  { %v488_v56 = vmul.f32 %v486_v54, %v480_v55 }
 0xc7f   :  { %490 = vrot.lane.b32.xlu0 %v488_v56, %s1123_s0 }
 0xcf1   :  { %v491_v58 = vpop.permute.xlu0 %490 }
 0xcf2   :  { %v493_v59 = vadd.f32 %v491_v58, %v483_v57 }
 0xcf4   :  { %983 = vtanh.f32 %v493_v59 }
 0xcfa   :  { %v984_v60 = vpop.eup %983 }
 0xcfb   :  { %496 = vrot.lane.b32.xlu1 %v984_v60, %s1123_s0 }
 0xd6d   :  { %v497_v61 = vpop.permute.xlu1 %496 }
 0xd6e   :  { %v1211_v62 = vmul.f32 %v497_v61, %v480_v55 }
 0xd70   :  { %v501_v63 = vpack.c.bf16 %v1211_v62, %v1211_v62  ;;  %v628_v27 = vrot.slane %v1211_v62, 6 }
 0xd72   :  { %503 = vrot.lane.b32.xlu2 %v501_v63, %s1118_s20  ;;  %v642_v32 = vsel %vm636_vm14, %v1202_v33, %v628_v27 }
 0xdcc   :  { %v504_v0 = vpop.permute.xlu2 %503 }
 0xdcd   :  { %887 = vmatmul.msk.bf16.vlgmr.msrb.gmra.mxu0 %vm150_vm5, %v504_v0  ;;  %v647_v0 = vrot.slane %v1211_v62, 4 }
 0xe4a   :  { %v517_v3 = vpop.f32.mrf.mxu0 }
 0xe4b   :  { %v521_v4 = vadd.f32 %v517_v3, %v500_v1  ;;  %v650_v3 = vrot.slane %v1202_v33, 2 }
 0xe4d   :  { %985 = vtanh.f32 %v521_v4  ;;  %v888_v9 = vmul.f32 -1.442695, %v521_v4 }
 0xe4f   :  { %987 = vpow2.f32 %v888_v9 }
 0xe52   :  { %v519_v5 = vpop.f32.mrf.mxu0 }
 0xe53   :  { %v986_v8 = vpop.eup %985 }
 0xe54   :  { %544 = vrot.lane.b32.xlu0 %v986_v8, %s1123_s0 }
 0xe55   :  { %v988_v10 = vpop.eup %987 }
 0xe56   :  { %v525_v11 = vadd.f32 1.0, %v988_v10  ;;  %v920_v10 = vld [vmem:[#allocation6 + $0x48] sm:$0xff] }
 0xe57   :  { %707 = vmatpush.bf16.msra.mxu2 %v920_v10 }
 0xe58   :  { %989 = vrcp.f32 %v525_v11  ;;  %v537_v16 = vand.u32 2147483648, %v525_v11  ;;  %vm531_vm1 = vweird.f32 %v525_v11  ;;  %v535_v17 = vand.u32 2147483647, %v525_v11 }
 0xe5a   :  { %v538_v19 = vor.u32 1.1754944e-38, %v537_v16  ;;  %vm536_vm3 = vcmp.eq.f32.partialorder %v535_v17, 8.507059e+37  ;;  %v934_v16 = vld [vmem:[#allocation8 + $0x2] ss:$0 sm:$0xff] }
 0xe5e   :  { %v990_v2 = vpop.eup %989 }
 0xe5f   :  { %v527_v12 = vmul.f32 %v990_v2, %v525_v11  ;;  %vm532_vm0 = vweird.f32 %v990_v2  ;;  %v919_v11 = vld [vmem:[#allocation6 + $0x40] sm:$0xff] }
 0xe60   :  { %vm533_vm2 = vmor %vm531_vm1, %vm532_vm0  ;;  %708 = vmatpush.bf16.msra.mxu2 %v919_v11 }
 0xe61   :  { %v528_v13 = vsub.f32 1.0, %v527_v12 }
 0xe63   :  { %v529_v14 = vmul.f32 %v990_v2, %v528_v13 }
 0xe65   :  { %v530_v15 = vadd.f32 %v990_v2, %v529_v14 }
 0xe67   :  { %v534_v18 = vsel %vm533_vm2, %v990_v2, %v530_v15 }
 0xe68   :  { %v539_v21 = vsel %vm536_vm3, %v538_v19, %v534_v18  ;;  %v935_v19 = vld [vmem:[#allocation8 + $0x3] ss:$0 sm:$0xff] }
 0xe69   :  { %v542_v23 = vmul.f32 %v539_v21, %v493_v59 }
 0xec6   :  { %v545_v20 = vpop.permute.xlu0 %544 }
 0xec7   :  { %v547_v22 = vmul.f32 %v545_v20, %v539_v21 }
 0xec9   :  { %549 = vrot.lane.b32.xlu1 %v547_v22, %s1123_s0 }
 0xf3b   :  { %v550_v24 = vpop.permute.xlu1 %549 }
 0xf3c   :  { %v552_v25 = vadd.f32 %v550_v24, %v542_v23 }
 0xf3e   :  { %991 = vtanh.f32 %v552_v25 }
 0xf44   :  { %v992_v26 = vpop.eup %991 }
 0xf45   :  { %555 = vrot.lane.b32.xlu2 %v992_v26, %s1123_s0 }
 0xf9f   :  { %v556_v28 = vpop.permute.xlu2 %555 }
 0xfa0   :  { %v558_v29 = vmul.f32 %v556_v28, %v539_v21 }
 0xfa2   :  { %v631_v30 = vrot.slane %v558_v29, 4  ;;  %v560_v31 = vpack.c.bf16 %v558_v29, %v558_v29  ;;  %v645_v61 = vrot.slane %v558_v29, 6 }
 0xfa4   :  { %562 = vrot.lane.b32.xlu0 %v560_v31, %s1118_s20  ;;  %v643_v34 = vsel %vm638_vm15, %v642_v32, %v631_v30 }
0x1016   :  { %v563_v35 = vpop.permute.xlu0 %562 }
0x1017   :  { %889 = vmatmul.msk.bf16.vlgmr.msra.gmra.mxu1 %vm150_vm5, %v563_v35 }
0x1094   :  { %v576_v37 = vpop.f32.mrf.mxu1 }
0x1095   :  { %v580_v39 = vadd.f32 %v576_v37, %v559_v36  ;;  %v739_v36 = vlaneseq }
0x1097   :  { %993 = vtanh.f32 %v580_v39  ;;  %v890_v44 = vmul.f32 -1.442695, %v580_v39 }
0x1099   :  { %995 = vpow2.f32 %v890_v44 }
0x109c   :  { %v578_v40 = vpop.f32.mrf.mxu1 }
0x109d   :  { %v994_v41 = vpop.eup %993  ;;  %v740_v40 = vshrl.u32 %v739_v36, 7 }
0x109e   :  { %603 = vrot.lane.b32.xlu1 %v994_v41, %s1123_s0  ;;  %v742_v41 = vand.u32 127, %v739_v36 }
0x109f   :  { %v996_v45 = vpop.eup %995 }
0x10a0   :  { %v584_v46 = vadd.f32 1.0, %v996_v45 }
0x10a2   :  { %997 = vrcp.f32 %v584_v46  ;;  %v596_v52 = vand.u32 2147483648, %v584_v46  ;;  %vm590_vm7 = vweird.f32 %v584_v46 }
0x10a4   :  { %v597_v53 = vor.u32 1.1754944e-38, %v596_v52 }
0x10a6   :  { %667 = vrot.lane.b32.xlu1 %v1196_v7, %s1118_s20  ;;  %v594_v7 = vand.u32 2147483647, %v584_v46 }
0x10a8   :  { %v998_v47 = vpop.eup %997  ;;  %vm595_vm9 = vcmp.eq.f32.partialorder %v594_v7, 8.507059e+37 }
0x10a9   :  { %v586_v48 = vmul.f32 %v998_v47, %v584_v46  ;;  %vm591_vm6 = vweird.f32 %v998_v47  ;;  %v743_v46 = vand.u32 1, %v740_v40 }
0x10aa   :  { %vm592_vm8 = vmor %vm590_vm7, %vm591_vm6 }
0x10ab   :  { %v587_v49 = vsub.f32 1.0, %v586_v48 }
0x10ad   :  { %v588_v50 = vmul.f32 %v998_v47, %v587_v49  ;;  %v1124_v49 = vmov 0.0  }
0x10ae   :  { %677 = vrot.lane.b32.xlu1 %v664_v43, %s1118_s20 }
0x10af   :  { %v589_v51 = vadd.f32 %v998_v47, %v588_v50 }
0x10b1   :  { %v593_v38 = vsel %vm592_vm8, %v998_v47, %v589_v51  ;;  %v744_v47 = vand.u32 1, %v742_v41 }
0x10b2   :  { %v598_v54 = vsel %vm595_vm9, %v597_v53, %v593_v38 }
0x10b3   :  { %v601_v56 = vmul.f32 %v598_v54, %v552_v25 }
0x1110   :  { %v604_v6 = vpop.permute.xlu1 %603 }
0x1111   :  { %v606_v55 = vmul.f32 %v604_v6, %v598_v54 }
0x1113   :  { %608 = vrot.lane.b32.xlu2 %v606_v55, %s1123_s0 }
0x1118   :  { %v668_v62 = vpop.permute.xlu1 %667 }
0x1120   :  { %v678_v33 = vpop.permute.xlu1 %677 }
0x116d   :  { %v609_v57 = vpop.permute.xlu2 %608 }
0x116e   :  { %v611_v58 = vadd.f32 %v609_v57, %v601_v56 }
0x1170   :  { %999 = vtanh.f32 %v611_v58 }
0x1176   :  { %v1000_v59 = vpop.eup %999 }
0x1177   :  { %614 = vrot.lane.b32.xlu0 %v1000_v59, %s1123_s0  ;;  %v917_v59 = vld [vmem:[#allocation6 + $0x30] sm:$0xff] }
0x11e9   :  { %v615_v60 = vpop.permute.xlu0 %614 }
0x11ea   :  { %v617_v63 = vmul.f32 %v615_v60, %v598_v54  ;;  %v918_v54 = vld [vmem:[#allocation6 + $0x38] sm:$0xff] }
0x11eb   :  { %811 = vmatpush.bf16.msrb.mxu1 %v918_v54 }
0x11ec   :  { %v634_v1 = vrot.slane %v617_v63, 2  ;;  %v659_v4 = vsel %vm636_vm14, %v617_v63, %v645_v61  ;;  %vm745_vm14 = vcmp.eq.s32.totalorder %v743_v46, %v744_v47 }
0x11ed   :  { %v660_v5 = vsel %vm638_vm15, %v659_v4, %v647_v0  ;;  %v746_v50 = vsel %vm745_vm14, 1.0, %v1124_v49 }
0x11ee   :  { %v661_v8 = vsel %vm640_vm4, %v660_v5, %v650_v3  ;;  %v644_v9 = vsel %vm640_vm4, %v643_v34, %v634_v1  ;;  %v747_v53 = vpack.c.bf16 %v746_v50, %v746_v50  ;;  %v936_v1 = vld [vmem:[#allocation8 + $0x1] ss:$0 sm:$0xff] }
0x11ef   :  { %675 = vrot.lane.b32.xlu0 %v661_v8, %s1118_s20  ;;  %669 = vrot.lane.b32.xlu2 %v644_v9, %s1118_s20 }
0x11f0   :  { %812 = vmatpush.bf16.msrb.mxu1 %v917_v59 }
0x1249   :  { %v670_v2 = vpop.permute.xlu2 %669 }
0x124a   :  { %v683_v13 = vsel %vm681_vm10, %v670_v2, %v678_v33 }
0x1261   :  { %v676_v12 = vpop.permute.xlu0 %675 }
0x1262   :  { %v682_v14 = vsel %vm681_vm10, %v668_v62, %v676_v12 }
0x1263   :  { %v684_v15 = vpack.c.bf16 %v683_v13, %v682_v14 }
0x1265   :  { %899 = vmatmul.msk.bf16.vlgmr.msra.gmra.mxu2 %vm150_vm5, %v684_v15 }
0x12e8   :  { %v710_v17 = vpop.f32.mrf.mxu2 }
0x12e9   :  { %v711_v18 = vadd.f32 %v934_v16, %v710_v17 }
0x12eb   :  { %1001 = vtanh.f32 %v711_v18 }
0x12f0   :  { %v712_v20 = vpop.f32.mrf.mxu2 }
0x12f1   :  { %v1002_v21 = vpop.eup %1001  ;;  %v713_v22 = vadd.f32 %v934_v16, %v712_v20 }
0x12f2   :  { %v718_v23 = vmul.f32 %v1002_v21, %v935_v19 }
0x12f3   :  { %1003 = vtanh.f32 %v713_v22 }
0x12f4   :  { %v720_v24 = vsel %vm150_vm5, %v718_v23, 0.0 }
0x12f5   :  { %721 = vadd.xlane.f32.xlu2 %v720_v24 }
0x12f9   :  { %v1004_v25 = vpop.eup %1003 }
0x12fa   :  { %v719_v26 = vmul.f32 %v1004_v25, %v935_v19 }
0x12fc   :  { %v723_v27 = vsel %vm150_vm5, %v719_v26, 0.0 }
0x12fd   :  { %724 = vadd.xlane.f32.xlu0 %v723_v27 }
0x1368   :  { %v722_v28 = vpop.xlane.xlu2 %721 }
0x1370   :  { %v725_v29 = vpop.xlane.xlu0 %724 }
0x1371   :  { %v726_v30 = vmax.f32 %v722_v28, %v725_v29 }
0x1373   :  { %v727_v31 = vrot.slane %v726_v30, 4 }
0x1375   :  { %v728_v32 = vmax.f32 %v726_v30, %v727_v31 }
0x1377   :  { %v729_v34 = vrot.slane %v728_v32, 2 }
0x1379   :  { %v730_v35 = vmax.f32 %v728_v32, %v729_v34 }
0x137b   :  { %v731_v37 = vrot.slane %v730_v35, 1 }
0x137d   :  { %v732_v39 = vmax.f32 %v730_v35, %v731_v37 }
0x137f   :  { %v733_v42 = vsub.f32 %v722_v28, %v732_v39  ;;  %v734_v43 = vsub.f32 %v725_v29, %v732_v39 }
0x1381   :  { %v735_v44 = vmul.f32 1.442695, %v733_v42  ;;  %v737_v45 = vmul.f32 1.442695, %v734_v43 }
0x1383   :  { %1005 = vpow2.f32 %v735_v44 }
0x1384   :  { %1007 = vpow2.f32 %v737_v45 }
0x1389   :  { %v1006_v48 = vpop.eup %1005 }
0x138a   :  { %v1008_v51 = vpop.eup %1007  ;;  %v748_v52 = vmul.f32 %v1006_v48, %v682_v14 }
0x138b   :  { %v749_v7 = vmul.f32 %v1008_v51, %v683_v13  ;;  %v767_v38 = vpack.c.bf16 %v1008_v51, %v1006_v48 }
0x138d   :  { %775 = vmatpush.bf16.msra.mxu0 %v767_v38  ;;  %v750_v6 = vpack.c.bf16 %v749_v7, %v748_v52 }
0x138f   :  { %761 = vmatpush.bf16.msra.mxu3 %v750_v6 }
0x1390   :  { %901 = vmatmul.msk.bf16.vlgmr.msra.gmra.mxu0 %vm681_vm10, %v747_v53 }
0x1392   :  { %900 = vmatmul.msk.bf16.vlgmr.msra.gmra.mxu3 %vm681_vm10, %v747_v53 }
0x140d   :  { %v777_v55 = vpop.f32.mrf.mxu0 }
0x140e   :  { %1009 = vrcp.f32 %v777_v55 }
0x1414   :  { %v1010_v56 = vpop.eup %1009 }
0x1415   :  { %784 = vperm.xlu1 %931, %v1010_v56   ;;  %v779_v57 = vpop.f32.mrf.mxu0  ;;  %v763_v58 = vpop.f32.mrf.mxu3 }
0x141d   :  { %v765_v60 = vpop.f32.mrf.mxu3 }
0x1487   :  { %v785_v61 = vpop.permute.xlu1 %784 }
0x1488   :  { %v787_v63 = vmul.f32 %v785_v61, %v763_v58 }
0x148a   :  { %v788_v0 = vpack.c.bf16 %v787_v63, %v787_v63 }
0x148c   :  { %910 = vmatmul.msk.bf16.vlgmr.msrb.gmra.mxu1 %vm150_vm5, %v788_v0 }
0x1509   :  { %v814_v3 = vpop.f32.mrf.mxu1 }
0x150a   :  { %v815_v4 = vadd.f32 %v936_v1, %v814_v3 }
0x150c   :  { %818 = vmax.xlane.f32.xlu1 %v815_v4 }
0x1511   :  { %v816_v5 = vpop.f32.mrf.mxu1 }
0x157f   :  { %v819_v8 = vpop.xlane.xlu1 %818 }
0x1580   :  { %v820_v9 = vsub.f32 %v815_v4, %v819_v8 }
0x1582   :  { %v821_v10 = vmul.f32 1.442695, %v820_v9 }
0x1584   :  { %1011 = vpow2.f32 %v821_v10 }
0x158a   :  { %v1012_v11 = vpop.eup %1011 }
0x158b   :  { %823 = vadd.xlane.f32.xlu2 %v1012_v11 }
0x15fe   :  { %v824_v62 = vpop.xlane.xlu2 %823 }
0x15ff   :  { %1013 = vlog2.f32 %v824_v62 }
0x1605   :  { %v1014_v2 = vpop.eup %1013 }
0x1606   :  { %v826_v33 = vmul.f32 0.6931472, %v1014_v2 }
0x1608   :  { %v827_v12 = vsub.f32 %v820_v9, %v826_v33 }
0x160a   :  { %828 = vst [vmem:[#allocation9] sm:$0xff] %v827_v12 }
0x160b   :  { %839 = dma.vmem_to_hbm [thread:$0]  %s835_s28, 128, %s837_s4, [#allocation5]  }
0x160c   :  { %1115 = dma.done.wait [#allocation5], 128  }
0x160d   :  { %1116 = vsyncadd [#allocation5], 4294967168 }
0x160e   :  { %844 = vsyncpa [#allocation4], 1 }
0x160f   :  { %845 = vsyncpa [#allocation7], 1 }
0x1610   :  { %846 = vsyncpa [#allocation5], 1 }

</bundles_post_ra>
